<compile_context>
chip_gen: v7x
topology: tpu7x:2x2x1
jax: 0.10.0
libtpu: 0.0.40
codegen_flags: <defaults>
</compile_context>

<pallas_src>
import functools

import jax
import jax.numpy as jnp
from jax.experimental import pallas as pl
from jax.experimental.pallas import tpu as pltpu

EPS = 1e-5


# --------------------------------------------------------------------------
# Pass A: conv1 (3x3, pad 1) + 1x1 projection shortcut, fused.
# --------------------------------------------------------------------------
def _conv1_shortcut_kernel(xpf_ref, wA_ref, vmask_ref, y1_ref, ysc_ref, st_ref,
                           *, H, W, Wp2, Sp, Cin_p, P):
  """One sample per grid step.

  xpf_ref  : (1, Cin_p, Sp)       zero-padded input, padded-flat layout
  wA_ref   : (3, 2P, 3*Cin_p)     per-dy weights; rows P:2P hold the 1x1
                                  shortcut folded into the centre tap
  vmask_ref: (1, H*Wp2)           1.0 on real output columns, 0.0 on row-wrap
                                  garbage columns
  y1_ref   : (1, P, Sp)           conv1 output (pre-BN), padded-flat layout
  ysc_ref  : (1, P, Sp)           shortcut output (pre-BN), padded-flat layout
  st_ref   : (1, 2P, 2)           per-sample [sum, sumsq] per channel
  """
  HW2 = H * Wp2
  mxu = wA_ref.dtype

  # Load the (small) input tile once and lift to f32; slices/concats below
  # then operate on cleanly tiled 8-row f32 groups, and the concatenated patch
  # matrix is cast to the MXU dtype once per dy group (not per tap).
  xf = xpf_ref[0].astype(jnp.float32)                      # (Cin_p, Sp)

  acc = jnp.zeros((2 * P, HW2), jnp.float32)
  for dy in range(3):
    base = dy * Wp2
    # Taps stacked along the sublane (K) axis: (3*Cin_p, HW2).
    rhs = jnp.concatenate(
        [xf[:, base + dx: base + dx + HW2] for dx in range(3)], axis=0)
    acc = acc + jnp.dot(wA_ref[dy], rhs.astype(mxu),
                        preferred_element_type=jnp.float32)

  # BN statistics over valid output columns only (one pass: sum and sumsq).
  valid = vmask_ref[...]                                   # (1, HW2)
  accv = acc * valid
  st_ref[0, :, 0:1] = jnp.sum(accv, axis=1, keepdims=True)
  st_ref[0, :, 1:2] = jnp.sum(accv * acc, axis=1, keepdims=True)

  # Write back in padded-flat layout: output (h, w) lands at flat position
  # (h+1)*Wp2 + (w+1) = j + (Wp2+1).  Row-wrap garbage columns land only in
  # halo positions, which downstream passes mask (pass B) or discard (wrapper).
  off = Wp2 + 1
  dt = y1_ref.dtype
  zlo = jnp.zeros((P, off), dt)
  zhi = jnp.zeros((P, Sp - off - HW2), dt)
  y1_ref[0, :, 0:off] = zlo
  y1_ref[0, :, off:off + HW2] = acc[:P, :].astype(dt)
  y1_ref[0, :, off + HW2:Sp] = zhi
  ysc_ref[0, :, 0:off] = zlo
  ysc_ref[0, :, off:off + HW2] = acc[P:, :].astype(dt)
  ysc_ref[0, :, off + HW2:Sp] = zhi


# --------------------------------------------------------------------------
# Pass B: bn1 (precomputed scale/shift) + relu + conv2 (3x3, pad 1).
# --------------------------------------------------------------------------
def _bn1_relu_conv2_kernel(y1_ref, aff1_ref, wB_ref, imask_ref, vmask_ref,
                           y2_ref, st_ref, *, H, W, Wp2, Sp, P):
  """y1_ref  : (1, P, Sp)     conv1 output (pre-BN), padded-flat layout
  aff1_ref  : (P, 2)          bn1 [scale, shift] (global batch stats)
  wB_ref    : (3, P, 3*P)     conv2 per-dy weights
  imask_ref : (1, Sp)         1.0 on interior pixels, 0.0 on halo/tail
  vmask_ref : (1, H*Wp2)      valid-output-column mask
  y2_ref    : (1, P, Sp)      conv2 output (pre-BN), padded-flat layout
  st_ref    : (1, P, 2)       per-sample [sum, sumsq] of conv2 output
  """
  HW2 = H * Wp2
  mxu = wB_ref.dtype

  scale = aff1_ref[:, 0:1]                                 # (P, 1)
  shift = aff1_ref[:, 1:2]
  # Fused bn1 + relu in f32, then restore exact zero padding for conv2 with a
  # single vector multiply (replaces the per-step halo-zeroing of the old
  # version; the mask also kills any garbage in y1's halo columns).
  h1 = jnp.maximum(y1_ref[0].astype(jnp.float32) * scale + shift, 0.0)
  h1 = h1 * imask_ref[...]                                 # (P, Sp)

  acc = jnp.zeros((P, HW2), jnp.float32)
  for dy in range(3):
    base = dy * Wp2
    rhs = jnp.concatenate(
        [h1[:, base + dx: base + dx + HW2] for dx in range(3)], axis=0)
    acc = acc + jnp.dot(wB_ref[dy], rhs.astype(mxu),
                        preferred_element_type=jnp.float32)

  valid = vmask_ref[...]
  accv = acc * valid
  st_ref[0, :, 0:1] = jnp.sum(accv, axis=1, keepdims=True)
  st_ref[0, :, 1:2] = jnp.sum(accv * acc, axis=1, keepdims=True)

  off = Wp2 + 1
  dt = y2_ref.dtype
  y2_ref[0, :, 0:off] = jnp.zeros((P, off), dt)
  y2_ref[0, :, off:off + HW2] = acc.astype(dt)
  y2_ref[0, :, off + HW2:Sp] = jnp.zeros((P, Sp - off - HW2), dt)


# --------------------------------------------------------------------------
# Pass C: bn2 + shortcut-BN + residual add + relu (elementwise, lane-dense).
# --------------------------------------------------------------------------
def _bn2_add_relu_kernel(y2_ref, ysc_ref, coef_ref, out_ref):
  """coef_ref: (P, 4) columns = [scale2, shift2, scale_sc, shift_sc]."""
  s2 = coef_ref[:, 0:1]
  t2 = coef_ref[:, 1:2]
  ss = coef_ref[:, 2:3]
  ts = coef_ref[:, 3:4]
  y2 = y2_ref[0].astype(jnp.float32)
  sc = ysc_ref[0].astype(jnp.float32)
  out_ref[0, :, :] = jnp.maximum(y2 * s2 + t2 + sc * ss + ts, 0.0)


# --------------------------------------------------------------------------
# Wrapper
# --------------------------------------------------------------------------
def _bn_scale_shift(stats, gamma, beta, count):
  """stats: (N, C, 2) per-sample [sum, sumsq] -> training-BN scale/shift."""
  tot = jnp.sum(stats, axis=0)                  # (C, 2) global sums
  mean = tot[:, 0] / count
  # Biased variance (train mode); clamp guards E[x^2]-E[x]^2 cancellation.
  # TODO(synk): a Welford-style combine would be safer for very large N*H*W.
  var = jnp.maximum(tot[:, 1] / count - mean * mean, 0.0)
  scale = gamma * jax.lax.rsqrt(var + EPS)
  shift = beta - mean * scale
  return scale, shift


def basic_block_forward(x_nchw, params, *, mxu_dtype=jnp.bfloat16):
  """x_nchw: (N, Cin, H, W) f32 -> (N, P, H, W) f32.

  mxu_dtype: dtype of the MXU matmul operands AND of the inter-pass
  activations in HBM (bfloat16 = perf configuration; float32 = validation
  configuration).  Accumulation and all BN/ReLU math stay f32 either way.
  """
  (w1, g1, b1, w2, g2, b2, wsc, gsc, bsc) = params
  N, Cin, H, W = x_nchw.shape
  P = w1.shape[0]
  f32 = jnp.float32
  act_dtype = mxu_dtype
  count = f32(N * H * W)

  Hp2, Wp2 = H + 2, W + 2
  S = Hp2 * Wp2                       # padded spatial size
  HW2 = H * Wp2                       # flat im2col window / conv output width
  # Flat length rounded to a lane multiple; must cover the largest im2col
  # window end (= S + 2).
  Sp = ((S + 2 + 127) // 128) * 128
  Cin_p = ((Cin + 7) // 8) * 8        # pad in-channels to a sublane multiple

  # ---- input: NCHW -> channel-major padded-flat (N, Cin_p, Sp) ----
  xpad = jnp.pad(x_nchw.astype(f32),
                 ((0, 0), (0, Cin_p - Cin), (1, 1), (1, 1)))
  xpf = jnp.pad(xpad.reshape(N, Cin_p, S), ((0, 0), (0, 0), (0, Sp - S)))
  xpf = xpf.astype(act_dtype)

  # ---- weights: OIHW -> (dy, out, dx*Cin + c); shortcut (1x1) folded into
  #      extra output rows of the centre tap so conv1+shortcut share matmuls.
  wA = jnp.zeros((3, 3, 2 * P, Cin_p), f32)
  wA = wA.at[:, :, :P, :Cin].set(jnp.transpose(w1, (2, 3, 0, 1)))
  wA = wA.at[1, 1, P:, :Cin].set(wsc[:, :, 0, 0])
  wA = jnp.transpose(wA, (0, 2, 1, 3)).reshape(3, 2 * P, 3 * Cin_p)
  wA = wA.astype(mxu_dtype)

  wB = jnp.transpose(w2, (2, 3, 0, 1))                    # (dy, dx, o, c)
  wB = jnp.transpose(wB, (0, 2, 1, 3)).reshape(3, P, 3 * P).astype(mxu_dtype)

  # ---- precomputed masks (avoid per-step integer div/mod in the kernels) ----
  col = jnp.arange(HW2, dtype=jnp.int32) % Wp2
  vmask = (col < W).astype(f32).reshape(1, HW2)
  pos = jnp.arange(Sp, dtype=jnp.int32)
  rr, cc = pos // Wp2, pos % Wp2
  imask = ((rr >= 1) & (rr <= H) & (cc >= 1) & (cc <= W)
           ).astype(f32).reshape(1, Sp)

  cparams = pltpu.CompilerParams(
      dimension_semantics=("parallel",),       # megacore split over batch
      vmem_limit_bytes=48 * 1024 * 1024)       # leaves headroom on v7x (64MiB)

  act_bytes = jnp.dtype(act_dtype).itemsize

  # ---------------- pass A: conv1 + shortcut ----------------
  flops_a = 2 * N * HW2 * (9 * Cin_p) * (2 * P)
  bytes_a = int(N * (Cin_p + 2 * P) * Sp * act_bytes
                + wA.size * act_bytes + N * 2 * P * 2 * 4)
  y1, ysc, stA = pl.pallas_call(
      functools.partial(_conv1_shortcut_kernel, H=H, W=W, Wp2=Wp2, Sp=Sp,
                        Cin_p=Cin_p, P=P),
      grid=(N,),
      in_specs=[
          pl.BlockSpec((1, Cin_p, Sp), lambda n: (n, 0, 0)),
          pl.BlockSpec((3, 2 * P, 3 * Cin_p), lambda n: (0, 0, 0)),
          pl.BlockSpec((1, HW2), lambda n: (0, 0)),
      ],
      out_specs=[
          pl.BlockSpec((1, P, Sp), lambda n: (n, 0, 0)),
          pl.BlockSpec((1, P, Sp), lambda n: (n, 0, 0)),
          pl.BlockSpec((1, 2 * P, 2), lambda n: (n, 0, 0)),
      ],
      out_shape=[
          jax.ShapeDtypeStruct((N, P, Sp), act_dtype),
          jax.ShapeDtypeStruct((N, P, Sp), act_dtype),
          jax.ShapeDtypeStruct((N, 2 * P, 2), f32),
      ],
      compiler_params=cparams,
      cost_estimate=pl.CostEstimate(flops=flops_a, transcendentals=0,
                                    bytes_accessed=bytes_a),
  )(xpf, wA, vmask)

  # Global batch statistics -> fused BN scale/shift (tiny JAX glue).
  scale1, shift1 = _bn_scale_shift(stA[:, :P, :], g1, b1, count)
  scale_sc, shift_sc = _bn_scale_shift(stA[:, P:, :], gsc, bsc, count)
  aff1 = jnp.stack([scale1, shift1], axis=1).astype(f32)        # (P, 2)

  # ---------------- pass B: bn1 + relu + conv2 ----------------
  flops_b = 2 * N * HW2 * (9 * P) * P
  bytes_b = int(N * 2 * P * Sp * act_bytes + wB.size * act_bytes
                + N * P * 2 * 4)
  y2, stB = pl.pallas_call(
      functools.partial(_bn1_relu_conv2_kernel, H=H, W=W, Wp2=Wp2, Sp=Sp, P=P),
      grid=(N,),
      in_specs=[
          pl.BlockSpec((1, P, Sp), lambda n: (n, 0, 0)),
          pl.BlockSpec((P, 2), lambda n: (0, 0)),
          pl.BlockSpec((3, P, 3 * P), lambda n: (0, 0, 0)),
          pl.BlockSpec((1, Sp), lambda n: (0, 0)),
          pl.BlockSpec((1, HW2), lambda n: (0, 0)),
      ],
      out_specs=[
          pl.BlockSpec((1, P, Sp), lambda n: (n, 0, 0)),
          pl.BlockSpec((1, P, 2), lambda n: (n, 0, 0)),
      ],
      out_shape=[
          jax.ShapeDtypeStruct((N, P, Sp), act_dtype),
          jax.ShapeDtypeStruct((N, P, 2), f32),
      ],
      compiler_params=cparams,
      cost_estimate=pl.CostEstimate(flops=flops_b, transcendentals=0,
                                    bytes_accessed=bytes_b),
  )(y1, aff1, wB, imask, vmask)

  scale2, shift2 = _bn_scale_shift(stB, g2, b2, count)
  coef = jnp.stack([scale2, shift2, scale_sc, shift_sc], axis=1).astype(f32)

  # ---------------- pass C: bn2 + shortcut BN + add + relu ----------------
  flops_c = 6 * N * P * Sp
  bytes_c = int(N * P * Sp * (2 * act_bytes + 4))
  out_p = pl.pallas_call(
      _bn2_add_relu_kernel,
      grid=(N,),
      in_specs=[
          pl.BlockSpec((1, P, Sp), lambda n: (n, 0, 0)),
          pl.BlockSpec((1, P, Sp), lambda n: (n, 0, 0)),
          pl.BlockSpec((P, 4), lambda n: (0, 0)),
      ],
      out_specs=pl.BlockSpec((1, P, Sp), lambda n: (n, 0, 0)),
      out_shape=jax.ShapeDtypeStruct((N, P, Sp), f32),
      compiler_params=cparams,
      cost_estimate=pl.CostEstimate(flops=flops_c, transcendentals=0,
                                    bytes_accessed=bytes_c),
  )(y2, ysc, coef)

  # padded-flat -> NCHW interior (the halo columns hold masked-off garbage and
  # are simply discarded here).
  out = out_p[:, :, :S].reshape(N, P, Hp2, Wp2)[:, :, 1:H + 1, 1:W + 1]
  return out


# --------------------------------------------------------------------------
# Pure-JAX reference (NCHW), matching PyTorch train-mode BasicBlock.
# --------------------------------------------------------------------------
def _reference_forward(x, params):
  (w1, g1, b1, w2, g2, b2, wsc, gsc, bsc) = params
  dn = ('NCHW', 'OIHW', 'NCHW')

  def bn(y, g, b):
    m = y.mean(axis=(0, 2, 3), keepdims=True)
    v = ((y - m) ** 2).mean(axis=(0, 2, 3), keepdims=True)
    return (y - m) * jax.lax.rsqrt(v + EPS) * g.reshape(1, -1, 1, 1) \
        + b.reshape(1, -1, 1, 1)

  y = jax.lax.conv_general_dilated(x, w1, (1, 1), ((1, 1), (1, 1)),
                                   dimension_numbers=dn)
  y = jax.nn.relu(bn(y, g1, b1))
  y = jax.lax.conv_general_dilated(y, w2, (1, 1), ((1, 1), (1, 1)),
                                   dimension_numbers=dn)
  y = bn(y, g2, b2)
  s = jax.lax.conv_general_dilated(x, wsc, (1, 1), ((0, 0), (0, 0)),
                                   dimension_numbers=dn)
  s = bn(s, gsc, bsc)
  return jax.nn.relu(y + s)


if __name__ == "__main__":
  # Small shapes: batch=2, in_planes=4, planes=8, spatial=16, stride=1.
  # in_planes != planes -> projection (1x1 conv + BN) shortcut is exercised.
  N, Cin, P, H, W = 2, 4, 8, 16, 16

  key = jax.random.PRNGKey(0)
  ks = jax.random.split(key, 10)
  x = jax.random.normal(ks[0], (N, Cin, H, W), jnp.float32)

  w1 = 0.1 * jax.random.normal(ks[1], (P, Cin, 3, 3), jnp.float32)   # conv1 OIHW
  w2 = 0.1 * jax.random.normal(ks[2], (P, P, 3, 3), jnp.float32)     # conv2 OIHW
  wsc = 0.1 * jax.random.normal(ks[3], (P, Cin, 1, 1), jnp.float32)  # shortcut
  g1 = 1.0 + 0.1 * jax.random.normal(ks[4], (P,), jnp.float32)
  b1 = 0.1 * jax.random.normal(ks[5], (P,), jnp.float32)
  g2 = 1.0 + 0.1 * jax.random.normal(ks[6], (P,), jnp.float32)
  b2 = 0.1 * jax.random.normal(ks[7], (P,), jnp.float32)
  gsc = 1.0 + 0.1 * jax.random.normal(ks[8], (P,), jnp.float32)
  bsc = 0.1 * jax.random.normal(ks[9], (P,), jnp.float32)

  params = (w1, g1, b1, w2, g2, b2, wsc, gsc, bsc)

  ref = jax.block_until_ready(_reference_forward(x, params))

  # f32 validation configuration: must match the f32 reference tightly.
  out_f32 = jax.block_until_ready(
      basic_block_forward(x, params, mxu_dtype=jnp.float32))
  assert out_f32.shape == (N, P, H, W), out_f32.shape
  err = float(jnp.max(jnp.abs(out_f32 - ref)))
  assert err < 1e-3, err

  # Default bf16 perf configuration (bf16 MXU operands + bf16 inter-pass
  # activations, f32 accumulation and BN/ReLU): loose sanity check only.
  out_bf16 = jax.block_until_ready(basic_block_forward(x, params))
  assert out_bf16.shape == (N, P, H, W), out_bf16.shape
  err_bf16 = float(jnp.max(jnp.abs(out_bf16 - ref)))
  assert err_bf16 < 2e-1, err_bf16

  print("KERNEL_OK")
</pallas_src>

<mosaic_0001>
module attributes {stable_mosaic.version = 11 : i64} {
  func.func @_conv1_shortcut_kernel(%arg0: i32, %arg1: memref<1x8x384xf32, #tpu.memory_space<vmem>>, %arg2: memref<3x16x24xf32, #tpu.memory_space<vmem>>, %arg3: memref<1x288xf32, #tpu.memory_space<vmem>>, %arg4: memref<1x8x384xf32, #tpu.memory_space<vmem>>, %arg5: memref<1x8x384xf32, #tpu.memory_space<vmem>>, %arg6: memref<1x16x2xf32, #tpu.memory_space<vmem>>) attributes {dimension_semantics = [#tpu.dimension_semantics<parallel>], iteration_bounds = array<i64: 2>, scalar_prefetch = 0 : i64, scratch_operands = 0 : i64, tpu.core_type = #tpu.core_type<tc>, window_params = [{transform_indices = @transform_0, window_bounds = array<i64: 1, 8, 384>}, {pipeline_mode = #tpu.pipeline_mode<synchronous>, transform_indices = @transform_1, window_bounds = array<i64: 3, 16, 24>}, {pipeline_mode = #tpu.pipeline_mode<synchronous>, transform_indices = @transform_2, window_bounds = array<i64: 1, 288>}, {transform_indices = @transform_3, window_bounds = array<i64: 1, 8, 384>}, {transform_indices = @transform_4, window_bounds = array<i64: 1, 8, 384>}, {transform_indices = @transform_5, window_bounds = array<i64: 1, 16, 2>}]} {
    %c0 = arith.constant 0 : index
    %c0_0 = arith.constant 0 : index
    %c0_1 = arith.constant 0 : index
    %0 = vector.load %arg1[%c0, %c0_0, %c0_1] : memref<1x8x384xf32, #tpu.memory_space<vmem>>, vector<1x8x384xf32>
    %1 = vector.shape_cast %0 : vector<1x8x384xf32> to vector<8x384xf32>
    %cst = arith.constant 0.000000e+00 : f32
    %2 = vector.broadcast %cst : f32 to vector<16x288xf32>
    %3 = vector.extract_strided_slice %1 {offsets = [0, 0], sizes = [8, 288], strides = [1, 1]} : vector<8x384xf32> to vector<8x288xf32>
    %4 = vector.extract_strided_slice %1 {offsets = [0, 1], sizes = [8, 288], strides = [1, 1]} : vector<8x384xf32> to vector<8x288xf32>
    %5 = vector.extract_strided_slice %1 {offsets = [0, 2], sizes = [8, 288], strides = [1, 1]} : vector<8x384xf32> to vector<8x288xf32>
    %6 = tpu.concatenate %3, %4, %5 in 0 : vector<8x288xf32>, vector<8x288xf32>, vector<8x288xf32> -> vector<24x288xf32>
    %c0_2 = arith.constant 0 : index
    %c0_3 = arith.constant 0 : index
    %c0_4 = arith.constant 0 : index
    %7 = vector.load %arg2[%c0_2, %c0_3, %c0_4] : memref<3x16x24xf32, #tpu.memory_space<vmem>>, vector<1x16x24xf32>
    %8 = vector.shape_cast %7 : vector<1x16x24xf32> to vector<16x24xf32>
    %cst_5 = arith.constant dense<0.000000e+00> : vector<16x288xf32>
    %9 = tpu.matmul %8, %6, %cst_5 {dimension_numbers = #tpu.dot_dimension_numbers<[1], [0], [0], [1], [0, 0, 1, 1], [], []>} : vector<16x24xf32>, vector<24x288xf32>, vector<16x288xf32> -> vector<16x288xf32>
    %10 = arith.addf %2, %9 : vector<16x288xf32>
    %11 = vector.extract_strided_slice %1 {offsets = [0, 18], sizes = [8, 288], strides = [1, 1]} : vector<8x384xf32> to vector<8x288xf32>
    %12 = vector.extract_strided_slice %1 {offsets = [0, 19], sizes = [8, 288], strides = [1, 1]} : vector<8x384xf32> to vector<8x288xf32>
    %13 = vector.extract_strided_slice %1 {offsets = [0, 20], sizes = [8, 288], strides = [1, 1]} : vector<8x384xf32> to vector<8x288xf32>
    %14 = tpu.concatenate %11, %12, %13 in 0 : vector<8x288xf32>, vector<8x288xf32>, vector<8x288xf32> -> vector<24x288xf32>
    %c1 = arith.constant 1 : index
    %c0_6 = arith.constant 0 : index
    %c0_7 = arith.constant 0 : index
    %15 = vector.load %arg2[%c1, %c0_6, %c0_7] : memref<3x16x24xf32, #tpu.memory_space<vmem>>, vector<1x16x24xf32>
    %16 = vector.shape_cast %15 : vector<1x16x24xf32> to vector<16x24xf32>
    %cst_8 = arith.constant dense<0.000000e+00> : vector<16x288xf32>
    %17 = tpu.matmul %16, %14, %cst_8 {dimension_numbers = #tpu.dot_dimension_numbers<[1], [0], [0], [1], [0, 0, 1, 1], [], []>} : vector<16x24xf32>, vector<24x288xf32>, vector<16x288xf32> -> vector<16x288xf32>
    %18 = arith.addf %10, %17 : vector<16x288xf32>
    %19 = vector.extract_strided_slice %1 {offsets = [0, 36], sizes = [8, 288], strides = [1, 1]} : vector<8x384xf32> to vector<8x288xf32>
    %20 = vector.extract_strided_slice %1 {offsets = [0, 37], sizes = [8, 288], strides = [1, 1]} : vector<8x384xf32> to vector<8x288xf32>
    %21 = vector.extract_strided_slice %1 {offsets = [0, 38], sizes = [8, 288], strides = [1, 1]} : vector<8x384xf32> to vector<8x288xf32>
    %22 = tpu.concatenate %19, %20, %21 in 0 : vector<8x288xf32>, vector<8x288xf32>, vector<8x288xf32> -> vector<24x288xf32>
    %c2 = arith.constant 2 : index
    %c0_9 = arith.constant 0 : index
    %c0_10 = arith.constant 0 : index
    %23 = vector.load %arg2[%c2, %c0_9, %c0_10] : memref<3x16x24xf32, #tpu.memory_space<vmem>>, vector<1x16x24xf32>
    %24 = vector.shape_cast %23 : vector<1x16x24xf32> to vector<16x24xf32>
    %cst_11 = arith.constant dense<0.000000e+00> : vector<16x288xf32>
    %25 = tpu.matmul %24, %22, %cst_11 {dimension_numbers = #tpu.dot_dimension_numbers<[1], [0], [0], [1], [0, 0, 1, 1], [], []>} : vector<16x24xf32>, vector<24x288xf32>, vector<16x288xf32> -> vector<16x288xf32>
    %26 = arith.addf %18, %25 : vector<16x288xf32>
    %c0_12 = arith.constant 0 : index
    %c0_13 = arith.constant 0 : index
    %27 = vector.load %arg3[%c0_12, %c0_13] : memref<1x288xf32, #tpu.memory_space<vmem>>, vector<1x288xf32>
    %28 = vector.broadcast %27 : vector<1x288xf32> to vector<16x288xf32>
    %29 = arith.mulf %26, %28 : vector<16x288xf32>
    %cst_14 = arith.constant dense<0.000000e+00> : vector<16xf32>
    %30 = vector.multi_reduction <add>, %29, %cst_14 [1] : vector<16x288xf32> to vector<16xf32>
    %31 = vector.shape_cast %30 : vector<16xf32> to vector<16x1xf32>
    %c0_15 = arith.constant 0 : index
    %c0_16 = arith.constant 0 : index
    %c0_17 = arith.constant 0 : index
    %32 = vector.load %arg6[%c0_15, %c0_16, %c0_17] : memref<1x16x2xf32, #tpu.memory_space<vmem>>, vector<1x16x1xf32>
    %33 = vector.shape_cast %32 : vector<1x16x1xf32> to vector<16x1xf32>
    %34 = vector.shape_cast %31 : vector<16x1xf32> to vector<1x16x1xf32>
    tpu.vector_store %arg6[%c0_15, %c0_16, %c0_17], %34 {strides = array<i32>} : memref<1x16x2xf32, #tpu.memory_space<vmem>>, vector<1x16x1xf32>,
    %35 = arith.mulf %29, %26 : vector<16x288xf32>
    %cst_18 = arith.constant dense<0.000000e+00> : vector<16xf32>
    %36 = vector.multi_reduction <add>, %35, %cst_18 [1] : vector<16x288xf32> to vector<16xf32>
    %37 = vector.shape_cast %36 : vector<16xf32> to vector<16x1xf32>
    %c0_19 = arith.constant 0 : index
    %c0_20 = arith.constant 0 : index
    %c1_21 = arith.constant 1 : index
    %38 = vector.load %arg6[%c0_19, %c0_20, %c1_21] : memref<1x16x2xf32, #tpu.memory_space<vmem>>, vector<1x16x1xf32>
    %39 = vector.shape_cast %38 : vector<1x16x1xf32> to vector<16x1xf32>
    %40 = vector.shape_cast %37 : vector<16x1xf32> to vector<1x16x1xf32>
    tpu.vector_store %arg6[%c0_19, %c0_20, %c1_21], %40 {strides = array<i32>} : memref<1x16x2xf32, #tpu.memory_space<vmem>>, vector<1x16x1xf32>,
    %cst_22 = arith.constant 0.000000e+00 : f32
    %41 = vector.broadcast %cst_22 : f32 to vector<8x19xf32>
    %cst_23 = arith.constant 0.000000e+00 : f32
    %42 = vector.broadcast %cst_23 : f32 to vector<8x77xf32>
    %c0_24 = arith.constant 0 : index
    %c0_25 = arith.constant 0 : index
    %c0_26 = arith.constant 0 : index
    %43 = vector.load %arg4[%c0_24, %c0_25, %c0_26] : memref<1x8x384xf32, #tpu.memory_space<vmem>>, vector<1x8x19xf32>
    %44 = vector.shape_cast %43 : vector<1x8x19xf32> to vector<8x19xf32>
    %45 = vector.shape_cast %41 : vector<8x19xf32> to vector<1x8x19xf32>
    tpu.vector_store %arg4[%c0_24, %c0_25, %c0_26], %45 {strides = array<i32>} : memref<1x8x384xf32, #tpu.memory_space<vmem>>, vector<1x8x19xf32>,
    %46 = vector.extract_strided_slice %26 {offsets = [0, 0], sizes = [8, 288], strides = [1, 1]} : vector<16x288xf32> to vector<8x288xf32>
    %c0_27 = arith.constant 0 : index
    %c0_28 = arith.constant 0 : index
    %c19 = arith.constant 19 : index
    %47 = vector.load %arg4[%c0_27, %c0_28, %c19] : memref<1x8x384xf32, #tpu.memory_space<vmem>>, vector<1x8x288xf32>
    %48 = vector.shape_cast %47 : vector<1x8x288xf32> to vector<8x288xf32>
    %49 = vector.shape_cast %46 : vector<8x288xf32> to vector<1x8x288xf32>
    tpu.vector_store %arg4[%c0_27, %c0_28, %c19], %49 {strides = array<i32>} : memref<1x8x384xf32, #tpu.memory_space<vmem>>, vector<1x8x288xf32>,
    %c0_29 = arith.constant 0 : index
    %c0_30 = arith.constant 0 : index
    %c307 = arith.constant 307 : index
    %50 = vector.load %arg4[%c0_29, %c0_30, %c307] : memref<1x8x384xf32, #tpu.memory_space<vmem>>, vector<1x8x77xf32>
    %51 = vector.shape_cast %50 : vector<1x8x77xf32> to vector<8x77xf32>
    %52 = vector.shape_cast %42 : vector<8x77xf32> to vector<1x8x77xf32>
    tpu.vector_store %arg4[%c0_29, %c0_30, %c307], %52 {strides = array<i32>} : memref<1x8x384xf32, #tpu.memory_space<vmem>>, vector<1x8x77xf32>,
    %c0_31 = arith.constant 0 : index
    %c0_32 = arith.constant 0 : index
    %c0_33 = arith.constant 0 : index
    %53 = vector.load %arg5[%c0_31, %c0_32, %c0_33] : memref<1x8x384xf32, #tpu.memory_space<vmem>>, vector<1x8x19xf32>
    %54 = vector.shape_cast %53 : vector<1x8x19xf32> to vector<8x19xf32>
    %55 = vector.shape_cast %41 : vector<8x19xf32> to vector<1x8x19xf32>
    tpu.vector_store %arg5[%c0_31, %c0_32, %c0_33], %55 {strides = array<i32>} : memref<1x8x384xf32, #tpu.memory_space<vmem>>, vector<1x8x19xf32>,
    %56 = vector.extract_strided_slice %26 {offsets = [8, 0], sizes = [8, 288], strides = [1, 1]} : vector<16x288xf32> to vector<8x288xf32>
    %c0_34 = arith.constant 0 : index
    %c0_35 = arith.constant 0 : index
    %c19_36 = arith.constant 19 : index
    %57 = vector.load %arg5[%c0_34, %c0_35, %c19_36] : memref<1x8x384xf32, #tpu.memory_space<vmem>>, vector<1x8x288xf32>
    %58 = vector.shape_cast %57 : vector<1x8x288xf32> to vector<8x288xf32>
    %59 = vector.shape_cast %56 : vector<8x288xf32> to vector<1x8x288xf32>
    tpu.vector_store %arg5[%c0_34, %c0_35, %c19_36], %59 {strides = array<i32>} : memref<1x8x384xf32, #tpu.memory_space<vmem>>, vector<1x8x288xf32>,
    %c0_37 = arith.constant 0 : index
    %c0_38 = arith.constant 0 : index
    %c307_39 = arith.constant 307 : index
    %60 = vector.load %arg5[%c0_37, %c0_38, %c307_39] : memref<1x8x384xf32, #tpu.memory_space<vmem>>, vector<1x8x77xf32>
    %61 = vector.shape_cast %60 : vector<1x8x77xf32> to vector<8x77xf32>
    %62 = vector.shape_cast %42 : vector<8x77xf32> to vector<1x8x77xf32>
    tpu.vector_store %arg5[%c0_37, %c0_38, %c307_39], %62 {strides = array<i32>} : memref<1x8x384xf32, #tpu.memory_space<vmem>>, vector<1x8x77xf32>,
    return
  }
  func.func @transform_0(%arg0: i32) -> (i32, i32, i32) {
    %c0_i32 = arith.constant 0 : i32
    %c0_i32_0 = arith.constant 0 : i32
    %c0_i32_1 = arith.constant 0 : i32
    return %arg0, %c0_i32, %c0_i32_0 : i32, i32, i32
  }
  func.func @transform_1(%arg0: i32) -> (i32, i32, i32) {
    %c0_i32 = arith.constant 0 : i32
    %c0_i32_0 = arith.constant 0 : i32
    %c0_i32_1 = arith.constant 0 : i32
    %c0_i32_2 = arith.constant 0 : i32
    return %c0_i32, %c0_i32_0, %c0_i32_1 : i32, i32, i32
  }
  func.func @transform_2(%arg0: i32) -> (i32, i32) {
    %c0_i32 = arith.constant 0 : i32
    %c0_i32_0 = arith.constant 0 : i32
    %c0_i32_1 = arith.constant 0 : i32
    return %c0_i32, %c0_i32_0 : i32, i32
  }
  func.func @transform_3(%arg0: i32) -> (i32, i32, i32) {
    %c0_i32 = arith.constant 0 : i32
    %c0_i32_0 = arith.constant 0 : i32
    %c0_i32_1 = arith.constant 0 : i32
    return %arg0, %c0_i32, %c0_i32_0 : i32, i32, i32
  }
  func.func @transform_4(%arg0: i32) -> (i32, i32, i32) {
    %c0_i32 = arith.constant 0 : i32
    %c0_i32_0 = arith.constant 0 : i32
    %c0_i32_1 = arith.constant 0 : i32
    return %arg0, %c0_i32, %c0_i32_0 : i32, i32, i32
  }
  func.func @transform_5(%arg0: i32) -> (i32, i32, i32) {
    %c0_i32 = arith.constant 0 : i32
    %c0_i32_0 = arith.constant 0 : i32
    %c0_i32_1 = arith.constant 0 : i32
    return %arg0, %c0_i32, %c0_i32_0 : i32, i32, i32
  }
}

</mosaic_0001>

<bundles_post_ra>
// kernel: tpu_custom_call.1
= control target key start
LH: loop header
LB: loop body
LE: loop exit
PB: predicated region body
PF: predicated region fallthrough
CT: control target
= control target key end

     0   :  { %11 = vsyncpa [#allocation3], 0  ;;  %s1929_s0 = inlined_call_operand.hbm [shape: f32[2,8,384], index: 0, kind: input, shape index: {}]   ;;  %s1930_s1 = inlined_call_operand.hbm [shape: f32[3,16,24], index: 1, kind: input, shape index: {}]   ;;  %s1931_s2 = inlined_call_operand.vmem [shape: f32[1,288], index: 2, kind: input, shape index: {}]   ;;  %s1932_s3 = inlined_call_operand.hbm [shape: f32[2,8,384], index: 3, kind: output, shape index: {0}]   ;;  %s1933_s4 = inlined_call_operand.hbm [shape: f32[2,8,384], index: 4, kind: output, shape index: {1}]   ;;  %s1934_s5 = inlined_call_operand.vmem [shape: f32[2,16,2], index: 5, kind: output, shape index: {2}]  }
   0x1   :  { %13 = vsyncpa [#allocation3 + $0x1], 0 }
   0x2   :  { %14 = vsyncpa [#allocation6], 0 }
   0x3   :  { %15 = vsyncpa [#allocation4], 0 }
   0x4   :  { %17 = vsyncpa [#allocation4 + $0x1], 0 }
   0x5   :  { %18 = vsyncpa [#allocation9], 0 }
   0x6   :  { %20 = vsyncpa [#allocation9 + $0x1], 0  ;;  %s1565_s18 = smov 0   ;;  %s1567_s19 = smov 0  }
   0x7   :  { %s1569_s20 = smov 0   ;;  %s1571_s21 = smov 0  }
   0x8 LB: > { %s1586_s22 = sadd.s32 4294967295, %s1521_s21   ;;  %s1143_s23 = sadd.s32 4294967294, %s1521_s21   ;;  %s1521_s21 = sphi %s1571_s21, %s1954_s21   ;;  %s1517_s20 = sphi %s1569_s20, %s1953_s20   ;;  %s1513_s19 = sphi %s1567_s19, %s1952_s19   ;;  %s1509_s18 = sphi %s1565_s18, %s1951_s18  }
   0x9   : > { %p46_p0 = scmp.ne.s32.totalorder %s1513_s19, %s1509_s18  ;;  %p1935_p1 = scmp.eq.s32.totalorder %s1586_s22, 0 }
   0xa   : > { %p118_p3 = scmp.eq.s32.totalorder %s1143_s23, 1  ;;  %p1144_p5 = scmp.ge.s32.totalorder %s1521_s21, 1 }
   0xb   : > { %p1595_p4 = por %p1935_p1, %p46_p0  ;;  %p177_p7 = scmp.lt.s32.totalorder %s1521_s21, 3 }
   0xc   : > { %p1600_p6 = por %p118_p3, %p46_p0  ;;  %s1523_s27 = smov [#allocation5]  }
   0xd   : > { %s1938_s24 = scalar_select %p1595_p4, 1, 0 }
   0xe   : > { %s1939_s25 = scalar_select %p1600_p6, 1, 0 }
   0xf   : > { %p1605_p8 = pnand %p1144_p5, %p177_p7  ;;  %s189_s28 = sshll.u32 %s1523_s27, 4  ;;  %s1609_s28 = int_to_ptr.vmem [resolvable:$true] %s189_s28 }
  0x10   : > { %s1621_s30 = sadd.s32 1, %s1521_s21   ;;  %s33_s6 = sadd.s32 1, %s1517_s20 }
  0x11   : > { %s1940_s26 = scalar_select %p1605_p8, 1, 0 }
  0x12   : > { %p1266_p9 = pneg %p1605_p8  ;;  %s30_s7 = ssub.s32 %s1521_s21, %s1621_s30 }
  0x13   : > { %s1361_s10 = scalar_lea.hbm %s1930_s1, 768 }
  0x14   : > { %p1616_p11 = pnand %p1266_p9, %p1935_p1  ;;  %p1362_p12 = scmp.ne.s32.totalorder %s1930_s1, %s1361_s10 }
  0x15   : > { %p1368_p5 = scmp.lt.u32.totalorder %s1361_s10, %s1930_s1 }
  0x16   : > { %p1363_p13 = pneg %p1616_p11 }
  0x18   : > { %p1364_p0 = pnand %p1363_p13, %p1362_p12 }
  0x1a   : > { %p1365_p3 = pneg %p1364_p0 }
  0x1c   : > { %p1370_p7 = pnand %p1368_p5, %p1365_p3 }
  0x1e   : > { %1373 = shalt.err (!%p1370_p7)
}
  0x1f   : > { %s1374_s15 = scalar_lea.vmem %s1609_s28, 768  ;;  %p1382_p2 = scmp.lt.s32.totalorder %s1609_s28, %s1609_s28 }
  0x20   : > { %p1375_p9 = scmp.ne.s32.totalorder %s1609_s28, %s1374_s15  ;;  %p1383_p6 = scmp.lt.s32.totalorder %s1374_s15, %s1374_s15 }
  0x22   : > { %p1377_p10 = pnand %p1375_p9, %p1363_p13  ;;  %p1384_p4 = por %p1383_p6, %p1382_p2 }
  0x24   : > { %p1378_p1 = pneg %p1377_p10 }
  0x26   : > { %p1385_p8 = pnand %p1384_p4, %p1378_p1 }
  0x28   : > { %1388 = shalt.err (!%p1385_p8)
}
  0x29   : > { %s1524_s16 = smov 128   ;;  %s1525_s17 = smov 8  }
  0x2a   : > { %1269 = dma.hbm_to_vmem [thread:$0]  (!%p1616_p11), %s1930_s1, 768, %s1609_s28, [#allocation6], %s1524_s16, %s1524_s16, %s1525_s17  }
  0x2b   : > { %p31_p2 = scmp.eq.s32.totalorder %s30_s7, 0  ;;  %p40_p1 = scmp.ne.s32.totalorder %s1517_s20, %s1513_s19 }
  0x2c   : > { %p41_p4 = scmp.eq.s32.totalorder %s1521_s21, 0  ;;  %p1282_p6 = scmp.lt.s32.totalorder %s1521_s21, 2 }
  0x2d   : > { %s1652_s8 = scalar_select %p31_p2, %s1517_s20, %s33_s6  }
  0x2e   : > { %p42_p8 = por %p41_p4, %p40_p1  ;;  %p1942_p10 = scmp.eq.s32.totalorder %s1586_s22, 1 }
  0x2f   : > { %s206_s10 = sand.u32 1, %s1517_s20   ;;  %s1252_s11 = smul.u32 384, %s1521_s21 }
  0x30   : > { %p1656_p12 = por %p1942_p10, %p40_p1  ;;  %s1251_s12 = smul.u32 24, %s206_s10 }
  0x31   : > { %p1662_p13 = pnand %p1282_p6, %p42_p8  ;;  %s1669_s6 = scalar_lea.hbm %s1929_s0, %s1252_s11 }
  0x32   : > { %s210_s13 = scalar_lea.vmem [#allocation2], %s1251_s12  ;;  %s207_s15 = scalar_lea.sflag [#allocation3], %s206_s10 }
  0x33   : > { %s218_s14 = sshll.u32 %s210_s13, 4  ;;  %s1389_s16 = scalar_lea.hbm %s1669_s6, 384  ;;  %s1671_s14 = int_to_ptr.vmem [resolvable:$true] %s218_s14 }
  0x34   : > { %p1390_p11 = scmp.ne.s32.totalorder %s1669_s6, %s1389_s16  ;;  %p1391_p0 = pneg %p1662_p13 }
  0x35   : > { %s1394_s27 = scalar_lea.hbm %s1929_s0, 768  ;;  %p1395_p7 = scmp.lt.u32.totalorder %s1669_s6, %s1929_s0 }
  0x36   : > { %p1392_p3 = pnand %p1391_p0, %p1390_p11  ;;  %p1396_p9 = scmp.lt.u32.totalorder %s1394_s27, %s1389_s16 }
  0x37   : > { %p1398_p1 = scmp.lt.u32.totalorder %s1389_s16, %s1669_s6 }
  0x38   : > { %p1393_p5 = pneg %p1392_p3  ;;  %p1397_p2 = por %p1396_p9, %p1395_p7 }
  0x3a   : > { %p1399_p4 = por %p1398_p1, %p1397_p2 }
  0x3c   : > { %p1400_p6 = pnand %p1399_p4, %p1393_p5 }
  0x3e   : > { %1403 = shalt.err (!%p1400_p6)
}
  0x3f   : > { %s1404_s10 = scalar_lea.vmem %s1671_s14, 384  ;;  %s1526_s12 = smov [#allocation2]  }
  0x40   : > { %p1405_p8 = scmp.ne.s32.totalorder %s1671_s14, %s1404_s10  ;;  %s1409_s7 = sshll.u32 %s1526_s12, 4  ;;  %s1410_s7 = int_to_ptr.vmem [resolvable:$false] %s1409_s7 }
  0x41   : > { %s1411_s13 = scalar_lea.vmem %s1410_s7, 768  ;;  %p1412_p3 = scmp.lt.s32.totalorder %s1671_s14, %s1410_s7 }
  0x42   : > { %p1407_p10 = pnand %p1405_p8, %p1391_p0  ;;  %p1413_p7 = scmp.lt.s32.totalorder %s1411_s13, %s1404_s10 }
  0x44   : > { %p1408_p11 = pneg %p1407_p10  ;;  %p1414_p9 = por %p1413_p7, %p1412_p3 }
  0x46   : > { %p1415_p2 = pnand %p1414_p9, %p1408_p11 }
  0x48   : > { %1418 = shalt.err (!%p1415_p2)
}
  0x49   : > { %1273 = dma.hbm_to_vmem [thread:$0]  (!%p1662_p13), %s1669_s6, 384, %s1671_s14, %s207_s15  }
  0x4a   : > { %p1945_p5 = scmp.ne.s32.totalorder %s1940_s26, 0 }
  0x4b   : > { %s1701_s16 = sand.u32 (!%p1945_p5), 1, %s1513_s19   ;;  %p1946_p0 = scmp.ne.s32.totalorder (!%p1945_p5), %s1938_s24, 0 }
  0x4c   : > { %227 = sbr.rel (%p1945_p5) target bundleno = 790 (0x316), region = 32  ;;  %s230_s23 = scalar_lea.sflag (!%p1945_p5), [#allocation3], %s1701_s16 }
  0x4d   : > { %s1704_s17 = smul.u32 (!%p1945_p5), 24, %s1701_s16 }
  0x4f   : > { %s233_s27 = scalar_lea.vmem (!%p1945_p5), [#allocation2], %s1704_s17 }
  0x53   : > { %1492 = dma.done.wait (%p1946_p0), %s230_s23, 384  }
  0x54   : > { %1494 = vsyncadd (%p1946_p0), %s230_s23, 4294966912  ;;  %p1947_p13 = scmp.eq.s32.totalorder %s1586_s22, 0 }
  0x56   : > { %1496 = dma.done.wait (%p1947_p13), [#allocation6], 768   ;;  %p1948_p1 = pmov %p1947_p13 }
  0x57   : > { %v1716_v0 = vld [vmem:[%s233_s27 + $0x8] sm:$0xff]  ;;  %v1718_v1 = vld [vmem:[%s233_s27 + $0x10] sm:$0xff]  ;;  %s1527_s26 = smov 126   ;;  %s1528_s29 = smov 127   ;;  %v1723_v3 = vld [vmem:[%s233_s27] sm:$0xff]  ;;  %vm291_vm0 = vcmask 1039360  }
  0x58   : > { %1498 = vsyncadd (%p1948_p1), [#allocation6], 4294966528  ;;  %v1326_v2 = vpack.i.bf16 %v1718_v1, %v1716_v0  ;;  %299 = vrot.lane.b32.xlu1 %v1716_v0, %s1527_s26  ;;  %v1728_v7 = vld [vmem:[#allocation5 + $0x10] sm:$0xff]  ;;  %vm348_vm1 = vcmask 195584   ;;  %s1529_s24 = smov 110   ;;  %v1530_v15 = vmov 0.0  }
  0x59   : > { %1190 = vmatprep.mubr.msk.f32.mxu1 %vm348_vm1, %v1728_v7  ;;  %419 = vmatprep.mubr.f32.mxu0 %v1530_v15  ;;  %vm303_vm2 = vcmask 1031168   ;;  %s1531_s6 = smov 92   ;;  %vm332_vm3 = vcmask 900096   ;;  %v313_v42 = vld [vmem:[#allocation5 + $0x18] sm:$0xff]  ;;  %v309_v43 = vld [vmem:[#allocation5] sm:$0xff]  ;;  %vm686_vm4 = vcmask 752640  }
  0x5a   : > { %1327 = vrot.lane.b32.xlu0 %v1326_v2, %s1528_s29  ;;  %v310_v60 = vld [vmem:[#allocation5 + $0x8] sm:$0xff]  ;;  %vm922_vm5 = vcmask 154624   ;;  %s1795_s14 = scalar_lea.vmem [#allocation7], %s1704_s17  ;;  %s1804_s28 = scalar_lea.vmem [#allocation8], %s1704_s17  ;;  %vm890_vm6 = vcmask 261120   ;;  %vm941_vm7 = vcmask 416768  }
  0x5b   : > { %923 = vst.msk [vmem:[%s1795_s14] sm:$0xff] %vm922_vm5, %v1530_v15  ;;  %945 = vst.msk [vmem:[%s1804_s28] sm:$0xff] %vm922_vm5, %v1530_v15  ;;  %s1532_s10 = smov 19   ;;  %vm943_vm8 = vcmask 1047960   ;;  %p274_p4 = scmp.lt.s32.totalorder %s1586_s22, 1  ;;  %vm900_vm9 = vcmask 7168  }
  0x5c   : > { %301 = vrot.lane.b32.xlu1 %v1718_v1, %s1527_s26  ;;  %vm919_vm10 = vcmask 15368   ;;  %s1254_s27 = smul.u32 384, %s1586_s22  ;;  %vm938_vm11 = vcmask 1047704   ;;  %s989_s15 = sshll.u32 %s1795_s14, 4  ;;  %s1882_s15 = int_to_ptr.vmem [resolvable:$true] %s989_s15 }
  0x5d   : > { %s275_s12 = scalar_select %p274_p4, %s1586_s22, 1 }
  0x5e   : > { %285 = vrot.lane.b32.xlu0 %v1723_v3, %s1528_s29  ;;  %s970_s11 = scalar_lea.sflag [#allocation9], %s1701_s16 }
  0x5f   : > { %s1168_s7 = sshll.u32 %s275_s12, 4  ;;  %s1533_s12 = smov [#allocation8]  }
  0x60   : > { %s278_s23 = scalar_lea.vmem %s1934_s5, %s1168_s7  ;;  %s1423_s7 = sshll.u32 %s1533_s12, 4  ;;  %s1424_s7 = int_to_ptr.vmem [resolvable:$false] %s1423_s7 }
  0x61   : > { %s1425_s13 = scalar_lea.vmem %s1424_s7, 768 }
  0x62   : > { %297 = vrot.lane.b32.xlu0 %v1723_v3, %s1527_s26  ;;  %s1003_s26 = sshll.u32 %s1804_s28, 4  ;;  %s1844_s26 = int_to_ptr.vmem [resolvable:$true] %s1003_s26 }
  0x63   : > { %p1426_p11 = scmp.lt.s32.totalorder %s1844_s26, %s1424_s7 }
  0xca   : > { %v300_v8 = vpop.permute.xlu1 %299 }
  0xcc   : > { %v1328_v4 = vpop.permute.xlu0 %1327 }
  0xcd   : > { %v1330_v5 = vunpack.i.h.bf16 %v1328_v4  ;;  %v1329_v6 = vunpack.i.l.bf16 %v1328_v4 }
  0xce   : > { %v1742_v16 = vpop.permute.xlu1 %301 }
  0xcf   : > { %v1331_v9 = vpack.i.bf16 %v1330_v5, %v1718_v1  ;;  %v1733_v10 = vsel %vm291_vm0, %v1329_v6, %v1330_v5  ;;  %v1746_v18 = vsel %vm303_vm2, %v300_v8, %v1742_v16  ;;  %v1223_v41 = vpack.c.bf16 %v1330_v5, %v1718_v1 }
  0xd0   : > { %v286_v11 = vpop.permute.xlu0 %285  ;;  %v1336_v12 = vpack.i.bf16 %v1733_v10, %v1716_v0  ;;  %v1351_v20 = vpack.i.bf16 %v1330_v5, %v1733_v10  ;;  %v1219_v49 = vpack.c.bf16 %v1733_v10, %v1716_v0  ;;  %v866_v10 = vld [vmem:[%s1931_s2] sm:$0x7] }
  0xd1   : > { %v1737_v13 = vsel %vm291_vm0, %v286_v11, %v1329_v6  ;;  %1332 = vrot.lane.b32.xlu1 %v1331_v9, %s1529_s24  ;;  %v666_v6 = vld [vmem:[#allocation5 + $0x20] sm:$0xff] }
  0xd2   : > { %1337 = vrot.lane.b32.xlu0 %v1336_v12, %s1529_s24  ;;  %v1341_v14 = vpack.i.bf16 %v1737_v13, %v1723_v3  ;;  %v1221_v50 = vpack.c.bf16 %v1737_v13, %v1723_v3  ;;  %v667_v3 = vld [vmem:[#allocation5 + $0x28] sm:$0xff] }
  0xd4   : > { %v298_v17 = vpop.permute.xlu0 %297 }
  0xd5   : > { %1342 = vrot.lane.b32.xlu1 %v1341_v14, %s1529_s24  ;;  %v1749_v19 = vsel %vm303_vm2, %v298_v17, %v300_v8 }
  0xd6   : > { %330 = vrot.lane.b32.xlu0 %v1742_v16, %s1529_s24 }
  0xd9   : > { %328 = vrot.lane.b32.xlu1 %v1746_v18, %s1529_s24 }
  0xda   : > { %326 = vrot.lane.b32.xlu0 %v1749_v19, %s1529_s24 }
  0xdd   : > { %1347 = vrot.lane.b32.xlu1 %v1326_v2, %s1531_s6 }
  0xde   : > { %1352 = vrot.lane.b32.xlu0 %v1351_v20, %s1531_s6 }
  0xe1   : > { %1357 = vrot.lane.b32.xlu1 %v1341_v14, %s1531_s6 }
  0xe2   : > { %682 = vrot.lane.b32.xlu0 %v1746_v18, %s1531_s6 }
  0xe5   : > { %684 = vrot.lane.b32.xlu1 %v1742_v16, %s1531_s6 }
  0xe6   : > { %680 = vrot.lane.b32.xlu0 %v1749_v19, %s1531_s6  ;;  %s1842_s6 = scalar_lea.hbm %s1933_s4, %s1254_s27 }
 0x143   : > { %v1333_v21 = vpop.permute.xlu1 %1332 }
 0x144   : > { %v1335_v22 = vunpack.i.h.bf16 %v1333_v21  ;;  %v1334_v23 = vunpack.i.l.bf16 %v1333_v21  ;;  %v1338_v24 = vpop.permute.xlu0 %1337 }
 0x145   : > { %v1340_v25 = vunpack.i.h.bf16 %v1338_v24  ;;  %v1339_v26 = vunpack.i.l.bf16 %v1338_v24 }
 0x146   : > { %v1215_v27 = vpack.c.bf16 %v1335_v22, %v1334_v23 }
 0x147   : > { %v1343_v28 = vpop.permute.xlu1 %1342  ;;  %v334_v29 = vsel %vm332_vm3, %v1339_v26, %v1334_v23  ;;  %v336_v30 = vsel %vm332_vm3, %v1340_v25, %v1335_v22 }
 0x148   : > { %v1345_v31 = vunpack.i.h.bf16 %v1343_v28  ;;  %v1344_v32 = vunpack.i.l.bf16 %v1343_v28  ;;  %1216 = vmatprep.subr.bf16.mxu1 %v1215_v27  ;;  %v331_v33 = vpop.permute.xlu0 %330  ;;  %v1211_v34 = vpack.c.bf16 %v336_v30, %v334_v29 }
 0x149   : > { %1218 = vmatpush3.bf16.msra.mxu1 %v1215_v27 }
 0x14a   : > { %1212 = vmatprep.subr.bf16.mxu0 %v1211_v34  ;;  %1188 = vmatprep.subr.mxu1 %v331_v33  ;;  %v333_v35 = vsel %vm332_vm3, %v1344_v32, %v1339_v26  ;;  %v335_v36 = vsel %vm332_vm3, %v1345_v31, %v1340_v25 }
 0x14b   : > { %v329_v37 = vpop.permute.xlu1 %328  ;;  %v1213_v38 = vpack.c.bf16 %v335_v36, %v333_v35 }
 0x14c   : > { %v327_v39 = vpop.permute.xlu0 %326  ;;  %v338_v40 = vsel %vm332_vm3, %v329_v37, %v331_v33 }
 0x14d   : > { %1214 = vmatpush1.bf16.msra.mxu0 %v1213_v38  ;;  %1189 = vmatpush3.msra.mxu1 %v331_v33  ;;  %v337_v48 = vsel %vm332_vm3, %v327_v39, %v329_v37 }
 0x14e   : > { %359 = vmatprep.subr.mxu0 %v338_v40  ;;  %1224 = vmatprep.subr.bf16.mxu1 %v1223_v41 }
 0x14f   : > { %v1348_v44 = vpop.permute.xlu1 %1347  ;;  %1191 = vmatmul.mubr.msk.f32.vlgmr.msra.gmra.mrb[0].mxu1 %vm348_vm1, %v313_v42 }
 0x150   : > { %v1350_v45 = vunpack.i.h.bf16 %v1348_v44  ;;  %v1349_v46 = vunpack.i.l.bf16 %v1348_v44  ;;  %1226 = vmatpush3.bf16.msra.mxu1 %v1223_v41  ;;  %v1353_v47 = vpop.permute.xlu0 %1352  ;;  %1199 = vmatprep.mubr.msk.f32.mxu1 %vm348_vm1, %v309_v43 }
 0x151   : > { %1197 = vmatprep.subr.mxu1 %v1742_v16  ;;  %v1355_v51 = vunpack.i.h.bf16 %v1353_v47  ;;  %v1354_v52 = vunpack.i.l.bf16 %v1353_v47  ;;  %360 = vmatpush1.msra.mxu0 %v337_v48 }
 0x152   : > { %1152 = vmatmul.mubr.msk.f32.vlgmr.msra.gmra.mrb[0].mxu0 %vm348_vm1, %v1728_v7  ;;  %1220 = vmatprep.subr.bf16.mxu0 %v1219_v49  ;;  %v688_v53 = vsel %vm686_vm4, %v1349_v46, %v1350_v45  ;;  %v868_v7 = vlaneseq }
 0x153   : > { %v1358_v54 = vpop.permute.xlu1 %1357  ;;  %1222 = vmatpush1.bf16.msra.mxu0 %v1221_v50  ;;  %425 = vmatprep.mubr.f32.mxu0 %v1530_v15  ;;  %v690_v55 = vsel %vm686_vm4, %v1354_v52, %v1355_v51  ;;  %v1231_v5 = vpack.c.bf16 %v1355_v51, %v1350_v45 }
 0x154   : > { %v1360_v56 = vunpack.i.h.bf16 %v1358_v54  ;;  %v1359_v57 = vunpack.i.l.bf16 %v1358_v54  ;;  %1198 = vmatpush3.msra.mxu1 %v1742_v16  ;;  %v683_v58 = vpop.permute.xlu0 %682  ;;  %517 = vmatprep.subr.mxu0 %v1746_v18  ;;  %v1227_v59 = vpack.c.bf16 %v690_v55, %v688_v53  ;;  %v869_v8 = vshrl.u32 %v868_v7, 7 }
 0x156   : > { %v687_v61 = vsel %vm686_vm4, %v1359_v57, %v1349_v46  ;;  %v689_v62 = vsel %vm686_vm4, %v1360_v56, %v1354_v52  ;;  %1153 = vmatmul.mubr.msk.f32.gmra.mrb[2].mxu0 %vm348_vm1, %v313_v42  ;;  %1235 = vmatprep.subr.bf16.mxu1 %v1227_v59  ;;  %v870_v9 = vsub.s32 0, %v869_v8  ;;  %v874_v11 = vsub.s32 1, %v869_v8 }
 0x157   : > { %v1229_v63 = vpack.c.bf16 %v689_v62, %v687_v61  ;;  %v685_v0 = vpop.permute.xlu1 %684  ;;  %518 = vmatpush1.msra.mxu0 %v1749_v19  ;;  %577 = vmatprep.mubr.f32.mxu0 %v1530_v15  ;;  %v878_v17 = vsub.s32 2, %v869_v8 }
 0x158   : > { %1228 = vmatprep.subr.bf16.mxu0 %v1227_v59  ;;  %1200 = vmatmul.mubr.msk.f32.vlgmr.msra.gmra.mrb[0].mxu1 %vm348_vm1, %v310_v60  ;;  %v692_v1 = vsel %vm686_vm4, %v683_v58, %v685_v0  ;;  %v681_v2 = vpop.permute.xlu0 %680  ;;  %v871_v12 = vrot.slane %v866_v10, %v870_v9  ;;  %v875_v16 = vrot.slane %v866_v10, %v874_v11 }
 0x159   : > { %1237 = vmatpush1.bf16.msra.mxu1 %v1229_v63  ;;  %778 = vmatprep.mubr.f32.mxu1 %v1530_v15  ;;  %v691_v4 = vsel %vm686_vm4, %v681_v2, %v683_v58  ;;  %v879_v24 = vrot.slane %v866_v10, %v878_v17 }
 0x15a   : > { %1156 = vmatmul.mubr.msk.f32.vlgmr.msra.gmra.mrb[0].mxu0 %vm348_vm1, %v309_v43  ;;  %1236 = vmatprep.subr.mxu1 %v692_v1 }
 0x15b   : > { %1230 = vmatpush1.bf16.msra.mxu0 %v1229_v63  ;;  %583 = vmatprep.mubr.f32.mxu0 %v1530_v15 }
 0x15c   : > { %712 = vmatprep.subr.mxu0 %v692_v1 }
 0x15d   : > { %1238 = vmatpush1.msra.mxu1 %v691_v4 }
 0x15e   : > { %1157 = vmatmul.mubr.msk.f32.gmra.mrb[2].mxu0 %vm348_vm1, %v310_v60  ;;  %1161 = vmatmul.mubr.msk.f32.vlgmr.msra.gmra.mrb[2].mxu1 %vm348_vm1, %v667_v3 }
 0x15f   : > { %713 = vmatpush1.msra.mxu0 %v691_v4  ;;  %1232 = vmatprep.subr.bf16.mxu1 %v1231_v5 }
 0x160   : > { %1234 = vmatpush3.bf16.msra.mxu1 %v1231_v5  ;;  %772 = vmatprep.mubr.f32.mxu0 %v1530_v15 }
 0x161   : > { %1206 = vmatprep.subr.mxu1 %v685_v0  ;;  %1208 = vmatprep.mubr.msk.f32.mxu1 %vm348_vm1, %v666_v6 }
 0x162   : > { %1160 = vmatmul.mubr.msk.f32.vlgmr.msra.gmra.mrb[0].mxu0 %vm348_vm1, %v666_v6 }
 0x164   : > { %1207 = vmatpush3.msra.mxu1 %v685_v0 }
 0x165   : > { %1209 = vmatmul.mubr.msk.f32.vlgmr.msra.gmra.mrb[0].mxu1 %vm348_vm1, %v667_v3 }
 0x231   : > { %v585_v13 = vpop.f32.mrb[2].mxu0  ;;  %v780_v14 = vpop.f32.mrb[2].mxu1 }
 0x232   : > { %v1239_v18 = vadd.f32 %v780_v14, %v585_v13  ;;  %v587_v19 = vpop.f32.mrb[3].mxu0  ;;  %v782_v20 = vpop.f32.mrb[3].mxu1 }
 0x233   : > { %v1240_v21 = vadd.f32 %v782_v20, %v587_v19 }
 0x234   : > { %v886_v22 = vmul.f32 %v1239_v18, %v871_v12 }
 0x235   : > { %951 = vrot.lane.b32.xlu1 %v1240_v21, %s1532_s10  ;;  %v774_v23 = vpop.f32.mrb[0].mxu0  ;;  %v887_v25 = vmul.f32 %v1240_v21, %v875_v16 }
 0x236   : > { %v906_v26 = vmul.f32 %v1239_v18, %v886_v22  ;;  %v883_v27 = vmul.f32 %v871_v12, %v774_v23  ;;  %v776_v28 = vpop.f32.mrb[1].mxu0 }
 0x237   : > { %v884_v29 = vmul.f32 %v875_v16, %v776_v28  ;;  %929 = vrot.lane.b32.xlu0 %v776_v28, %s1532_s10  ;;  %v895_v30 = vadd.f32 %v887_v25, %v886_v22  ;;  %v907_v31 = vmul.f32 %v1240_v21, %v887_v25 }
 0x238   : > { %v903_v32 = vmul.f32 %v883_v27, %v774_v23  ;;  %v1210_v33 = vpop.f32.mrb[0].mxu1 }
 0x239   : > { %v904_v34 = vmul.f32 %v884_v29, %v776_v28  ;;  %v888_v35 = vmul.f32 %v1210_v33, %v879_v24  ;;  %v851_v36 = vpop.f32.mrb[1].mxu1  ;;  %v889_v37 = vadd.f32 %v884_v29, %v883_v27  ;;  %v914_v38 = vadd.f32 %v907_v31, %v906_v26 }
 0x23a   : > { %v885_v39 = vmul.f32 %v879_v24, %v851_v36  ;;  %931 = vrot.lane.b32.xlu1 %v851_v36, %s1532_s10 }
 0x23b   : > { %v908_v40 = vmul.f32 %v1210_v33, %v888_v35  ;;  %953 = vrot.lane.b32.xlu0 %v1210_v33, %s1532_s10  ;;  %v896_v41 = vsel %vm890_vm6, %v888_v35, 0.0  ;;  %v909_v42 = vadd.f32 %v904_v34, %v903_v32 }
 0x23c   : > { %v905_v43 = vmul.f32 %v885_v39, %v851_v36  ;;  %v897_v44 = vadd.f32 %v896_v41, %v895_v30  ;;  %v891_v45 = vsel %vm890_vm6, %v885_v39, 0.0 }
 0x23d   : > { %v892_v46 = vadd.f32 %v891_v45, %v889_v37  ;;  %v915_v47 = vsel %vm890_vm6, %v908_v40, 0.0 }
 0x23e   : > { %v910_v48 = vsel %vm890_vm6, %v905_v43, 0.0  ;;  %v916_v49 = vadd.f32 %v915_v47, %v914_v38 }
 0x23f   : > { %v911_v50 = vadd.f32 %v910_v48, %v909_v42 }
 0x25a   : > { %898 = vadd.xlane.f32.xlu0 %v897_v44 }
 0x25e   : > { %893 = vadd.xlane.f32.xlu1 %v892_v46  ;;  %912 = vadd.xlane.f32.xlu0 %v911_v50 }
 0x262   : > { %917 = vadd.xlane.f32.xlu1 %v916_v49 }
 0x273   : > { %927 = vrot.lane.b32.xlu1 %v774_v23, %s1532_s10 }
 0x274   : > { %949 = vrot.lane.b32.xlu0 %v1239_v18, %s1532_s10  ;;  %s1419_s10 = scalar_lea.vmem %s1844_s26, 384 }
 0x275   : > { %p1420_p6 = scmp.ne.s32.totalorder %s1844_s26, %s1419_s10  ;;  %p1427_p3 = scmp.lt.s32.totalorder %s1425_s13, %s1419_s10 }
 0x277   : > { %p1421_p8 = pnand %p1420_p6, %p1656_p12  ;;  %p1428_p7 = por %p1427_p3, %p1426_p11 }
 0x279   : > { %p1422_p10 = pneg %p1421_p8 }
 0x27b   : > { %p1429_p9 = pnand %p1428_p7, %p1422_p10 }
 0x2a7   : > { %v952_v51 = vpop.permute.xlu1 %951 }
 0x2a9   : > { %v1819_v52 = vpop.permute.xlu0 %929 }
 0x2ac   : > { %v932_v53 = vpop.permute.xlu1 %931 }
 0x2ad   : > { %v934_v54 = vsel %vm922_vm5, %v1819_v52, %v932_v53  ;;  %v954_v55 = vpop.permute.xlu0 %953 }
 0x2ae   : > { %942 = vst.msk [vmem:[%s1795_s14 + $0x10] sm:$0xff] %vm941_vm7, %v934_v54  ;;  %v956_v56 = vsel %vm922_vm5, %v952_v51, %v954_v55 }
 0x2af   : > { %962 = vst.msk [vmem:[%s1804_s28 + $0x10] sm:$0xff] %vm941_vm7, %v956_v56 }
 0x2b0   : > { %944 = vst.msk [vmem:[%s1795_s14 + $0x10] sm:$0xff] %vm943_vm8, %v1530_v15  ;;  %963 = vst.msk [vmem:[%s1804_s28 + $0x10] sm:$0xff] %vm943_vm8, %v1530_v15 }
 0x2e7   : > { %v899_v57 = vpop.xlane.xlu0 %898 }
 0x2e8   : > { %902 = vst.msk [vmem:[%s278_s23 + $0x8] sm:$0xff] %vm900_vm9, %v899_v57 }
 0x2eb   : > { %v894_v58 = vpop.xlane.xlu1 %893  ;;  %v913_v59 = vpop.xlane.xlu0 %912 }
 0x2ec   : > { %901 = vst.msk [vmem:[%s278_s23] sm:$0xff] %vm900_vm9, %v894_v58 }
 0x2ed   : > { %920 = vst.msk [vmem:[%s278_s23] sm:$0xff] %vm919_vm10, %v913_v59 }
 0x2ef   : > { %v918_v15 = vpop.xlane.xlu1 %917  ;;  %v950_v60 = vpop.permute.xlu0 %949 }
 0x2f0   : > { %921 = vst.msk [vmem:[%s278_s23 + $0x8] sm:$0xff] %vm919_vm10, %v918_v15  ;;  %v955_v61 = vsel %vm922_vm5, %v950_v60, %v952_v51 }
 0x2f1   : > { %960 = vst.msk [vmem:[%s1804_s28] sm:$0xff] %vm938_vm11, %v950_v60  ;;  %961 = vst [vmem:[%s1804_s28 + $0x8] sm:$0xff] %v955_v61 }
 0x2f2   : > { %1432 = shalt.err (!%p1429_p9)
}
 0x2f3   : > { %s1433_s28 = scalar_lea.hbm %s1842_s6, 384  ;;  %s1437_s29 = scalar_lea.hbm %s1933_s4, 768 }
 0x2f4   : > { %p1434_p2 = scmp.ne.s32.totalorder %s1842_s6, %s1433_s28  ;;  %p1438_p13 = scmp.lt.u32.totalorder %s1842_s6, %s1933_s4 }
 0x2f5   : > { %p1439_p1 = scmp.lt.u32.totalorder %s1437_s29, %s1433_s28  ;;  %p1441_p6 = scmp.lt.u32.totalorder %s1433_s28, %s1842_s6 }
 0x2f6   : > { %p1435_p5 = pnand %p1434_p2, %p1656_p12 }
 0x2f7   : > { %p1440_p4 = por %p1439_p1, %p1438_p13 }
 0x2f8   : > { %p1436_p0 = pneg %p1435_p5 }
 0x2f9   : > { %p1442_p8 = por %p1441_p6, %p1440_p4 }
 0x2fb   : > { %p1443_p10 = pnand %p1442_p8, %p1436_p0 }
 0x2fd   : > { %1446 = shalt.err (!%p1443_p10)
}
 0x2fe   : > { %1263 = dma.vmem_to_hbm [thread:$0]  (%p1656_p12), %s1844_s26, 384, %s1842_s6, %s970_s11   ;;  %v928_v62 = vpop.permute.xlu1 %927 }
 0x2ff   : > { %s1878_s13 = scalar_lea.hbm %s1932_s3, %s1254_s27  ;;  %v933_v63 = vsel %vm922_vm5, %v928_v62, %v1819_v52  ;;  %939 = vst.msk [vmem:[%s1795_s14] sm:$0xff] %vm938_vm11, %v928_v62  ;;  %s965_s26 = scalar_lea.sflag [#allocation4], %s1701_s16 }
 0x300   : > { %940 = vst [vmem:[%s1795_s14 + $0x8] sm:$0xff] %v933_v63  ;;  %s1447_s6 = scalar_lea.vmem %s1882_s15, 384  ;;  %s1534_s22 = smov [#allocation7]  }
 0x301   : > { %p1448_p11 = scmp.ne.s32.totalorder %s1882_s15, %s1447_s6  ;;  %s1451_s27 = sshll.u32 %s1534_s22, 4  ;;  %s1452_s27 = int_to_ptr.vmem [resolvable:$false] %s1451_s27 }
 0x302   : > { %s1453_s11 = scalar_lea.vmem %s1452_s27, 768  ;;  %p1454_p9 = scmp.lt.s32.totalorder %s1882_s15, %s1452_s27 }
 0x303   : > { %p1449_p3 = pnand %p1448_p11, %p1656_p12  ;;  %p1455_p2 = scmp.lt.s32.totalorder %s1453_s11, %s1447_s6 }
 0x305   : > { %p1450_p7 = pneg %p1449_p3  ;;  %p1456_p5 = por %p1455_p2, %p1454_p9 }
 0x307   : > { %p1457_p0 = pnand %p1456_p5, %p1450_p7 }
 0x309   : > { %1460 = shalt.err (!%p1457_p0)
}
 0x30a   : > { %s1461_s16 = scalar_lea.hbm %s1878_s13, 384  ;;  %s1465_s17 = scalar_lea.hbm %s1932_s3, 768 }
 0x30b   : > { %p1462_p13 = scmp.ne.s32.totalorder %s1878_s13, %s1461_s16  ;;  %p1466_p6 = scmp.lt.u32.totalorder %s1878_s13, %s1932_s3 }
 0x30c   : > { %p1467_p8 = scmp.lt.u32.totalorder %s1465_s17, %s1461_s16  ;;  %p1469_p11 = scmp.lt.u32.totalorder %s1461_s16, %s1878_s13 }
 0x30d   : > { %p1463_p1 = pnand %p1462_p13, %p1656_p12 }
 0x30e   : > { %p1468_p10 = por %p1467_p8, %p1466_p6 }
 0x30f   : > { %p1464_p4 = pneg %p1463_p1 }
 0x310   : > { %p1470_p3 = por %p1469_p11, %p1468_p10 }
 0x312   : > { %p1471_p7 = pnand %p1470_p3, %p1464_p4 }
 0x314   : > { %1474 = shalt.err (!%p1471_p7)
}
 0x315   : > { %1262 = dma.vmem_to_hbm [thread:$0]  (%p1656_p12), %s1882_s15, 384, %s1878_s13, %s965_s26  }
 0x316 PF: > { %s1018_s24 = sand.u32 1, %s1509_s18   ;;  %p1949_p9 = scmp.ne.s32.totalorder %s1939_s25, 0 }
 0x317   : > { %p1950_p2 = scmp.ge.s32.totalorder %s1521_s21, 2  ;;  %s1019_s12 = scalar_lea.sflag [#allocation4], %s1018_s24 }
 0x319   : > { %p1275_p5 = pnand %p1950_p2, %p1949_p9 }
 0x31b   : > { %1500 = dma.done.wait (!%p1275_p5), %s1019_s12, 384  }
 0x31c   : > { %1502 = vsyncadd (!%p1275_p5), %s1019_s12, 4294966912  ;;  %s1028_s10 = scalar_lea.sflag [#allocation9], %s1018_s24 }
 0x31d   : > { %1504 = dma.done.wait (!%p1275_p5), %s1028_s10, 384  }
 0x31e   : > { %1506 = vsyncadd (!%p1275_p5), %s1028_s10, 4294966912  ;;  %p23_p12 = scmp.ge.s32.totalorder %s1621_s30, 4   ;;  %s1951_s18 = smov %s1513_s19 }
 0x31f   : > { %s1952_s19 = smov %s1517_s20  ;;  %s1953_s20 = smov %s1652_s8 }
 0x320   : > { %s1954_s21 = smov %s1621_s30  ;;  %25 = sbr.rel (!%p23_p12) target bundleno = 8 (0x8), region = 112 }
 0x327   :  { %1041 = vsyncpa [#allocation3], 1 }
 0x328   :  { %1043 = vsyncpa [#allocation3 + $0x1], 1 }
 0x329   :  { %1044 = vsyncpa [#allocation6], 1 }
 0x32a   :  { %1045 = vsyncpa [#allocation4], 1 }
 0x32b   :  { %1047 = vsyncpa [#allocation4 + $0x1], 1 }
 0x32c   :  { %1048 = vsyncpa [#allocation9], 1 }
 0x32d   :  { %1050 = vsyncpa [#allocation9 + $0x1], 1 }

</bundles_post_ra>
